<compile_context>
chip_gen: v7x
topology: tpu7x:2x2x1
jax: 0.10.0
libtpu: 0.0.40
codegen_flags: <defaults>
</compile_context>

<pallas_src>
import functools

import jax
import jax.numpy as jnp
from jax.experimental import pallas as pl
from jax.experimental.pallas import tpu as pltpu


def _round_up(x: int, m: int) -> int:
    return ((x + m - 1) // m) * m


# ----------------------------- kernels --------------------------------------

def _resident_kernel(x_ref, w_ref, gb_ref, o_ref):
    # x_ref:  (1, TM, Kp)   rows of one batch element (compute dtype)
    # w_ref:  (Kp, Np)      pre-transposed weight, resident across the grid
    # gb_ref: (1, 2, Np)    row 0 = gamma, row 1 = bias*gamma   (f32)
    # o_ref:  (1, TM, Np)
    acc = jnp.dot(x_ref[0], w_ref[...], preferred_element_type=jnp.float32)
    gb = gb_ref[0]                      # (2, Np) f32
    out = acc * gb[0:1, :] + gb[1:2, :]   # (x@W + b) * gamma, epilogue in f32
    o_ref[0] = out.astype(o_ref.dtype)


def _tiled_kernel(x_ref, w_ref, gb_ref, o_ref, acc_ref):
    # x_ref:  (1, TM, TK); w_ref: (TK, TN) (pre-transposed tile)
    # gb_ref: (1, 2, TN);  o_ref: (1, TM, TN); acc_ref: (TM, TN) f32 scratch
    k = pl.program_id(3)

    @pl.when(k == 0)
    def _():
        acc_ref[...] = jnp.zeros_like(acc_ref)

    acc_ref[...] += jnp.dot(x_ref[0], w_ref[...],
                            preferred_element_type=jnp.float32)

    @pl.when(k == pl.num_programs(3) - 1)
    def _():
        gb = gb_ref[0]                  # (2, TN) f32
        o_ref[0] = (acc_ref[...] * gb[0:1, :] + gb[1:2, :]).astype(o_ref.dtype)


# ----------------------------- wrapper ---------------------------------------

def conditional_linear(x, t, lin_w, lin_b, embed_w, *,
                       use_bf16=False,            # explicit precision choice
                       tm=512, tn=256, tk=512,
                       vmem_budget_bytes=24 * 1024 * 1024,
                       force_general=False):
    """
    x:        (B, S, num_in)     float32 (or bf16)
    t:        (B,)               int timestep indices
    lin_w:    (num_out, num_in)  PyTorch nn.Linear layout
    lin_b:    (num_out,)
    embed_w:  (n_steps, num_out)
    returns:  (B, S, num_out)    same dtype as x
    """
    B, S, num_in = x.shape
    num_out = lin_w.shape[0]
    out_dtype = x.dtype

    # Embedding gather + epilogue constants outside the kernel (f32 epilogue):
    #   (x@W.T + b)*gamma == (x@W.T)*gamma + (b*gamma)
    gamma = jnp.take(embed_w, t.astype(jnp.int32), axis=0).astype(jnp.float32)
    bias_gamma = gamma * lin_b.astype(jnp.float32)[None, :]
    gb = jnp.stack([gamma, bias_gamma], axis=1)          # (B, 2, num_out)

    # One-time HBM transpose: kernel sees a native (K, N) RHS.
    w_t = lin_w.T                                        # (num_in, num_out)

    compute_dtype = jnp.bfloat16 if use_bf16 else x.dtype
    sub = 16 if compute_dtype == jnp.bfloat16 else 8     # sublane multiple
    in_bytes = jnp.dtype(compute_dtype).itemsize
    out_bytes = jnp.dtype(out_dtype).itemsize

    Sp = _round_up(S, sub)
    Kp128 = _round_up(num_in, 128)
    Np128 = _round_up(num_out, 128)

    # ---- choose path + tile sizes ----
    TM = max(sub, min(_round_up(tm, sub), Sp))
    w_res_bytes = 2 * Kp128 * Np128 * in_bytes           # conservative (2 bufs)

    def _resident_footprint(tm_):
        return (w_res_bytes
                + 2 * tm_ * Kp128 * in_bytes              # x double-buffer
                + 2 * tm_ * Np128 * out_bytes             # out double-buffer
                + 2 * 2 * Np128 * 4)                      # gamma/bias rows

    resident = (not force_general) and _resident_footprint(sub) <= vmem_budget_bytes
    if resident:
        while TM > sub and _resident_footprint(TM) > vmem_budget_bytes:
            TM = max(sub, _round_up(TM // 2, sub))
        Kp, Np = Kp128, Np128
    else:
        TN = min(_round_up(tn, 128), Np128)
        TK = min(_round_up(tk, 128), Kp128)
        Kp = _round_up(num_in, TK)                        # TK | Kp exactly
        Np = _round_up(num_out, TN)                       # TN | Np exactly

    # ---- padding: K zero-padding is required for reduction correctness;
    #      S only padded to the sublane multiple (tiny copy, only if ragged).
    if Sp != S or Kp != num_in:
        x = jnp.pad(x, ((0, 0), (0, Sp - S), (0, Kp - num_in)))
    if Kp != num_in or Np != num_out:
        w_t = jnp.pad(w_t, ((0, Kp - num_in), (0, Np - num_out)))
    if Np != num_out:
        gb = jnp.pad(gb, ((0, 0), (0, 0), (0, Np - num_out)))

    # One-time cast (no per-grid-step cast copies inside the kernel).
    x = x.astype(compute_dtype)
    w_t = w_t.astype(compute_dtype)

    vmem_limit = 48 * 1024 * 1024      # safe on v7x (64 MiB physical per TC)

    if resident:
        grid = (B, pl.cdiv(Sp, TM))
        out_p = pl.pallas_call(
            _resident_kernel,
            out_shape=jax.ShapeDtypeStruct((B, Sp, Np), out_dtype),
            grid_spec=pltpu.PrefetchScalarGridSpec(
                num_scalar_prefetch=0,
                grid=grid,
                in_specs=[
                    pl.BlockSpec((1, TM, Kp), lambda b, m: (b, m, 0)),
                    pl.BlockSpec((Kp, Np),    lambda b, m: (0, 0)),   # resident
                    pl.BlockSpec((1, 2, Np),  lambda b, m: (b, 0, 0)),
                ],
                out_specs=pl.BlockSpec((1, TM, Np), lambda b, m: (b, m, 0)),
            ),
            compiler_params=pltpu.CompilerParams(
                dimension_semantics=("parallel", "parallel"),
                vmem_limit_bytes=vmem_limit,
            ),
        )(x, w_t, gb)
    else:
        grid = (B, pl.cdiv(Sp, TM), Np // TN, Kp // TK)
        out_p = pl.pallas_call(
            _tiled_kernel,
            out_shape=jax.ShapeDtypeStruct((B, Sp, Np), out_dtype),
            grid_spec=pltpu.PrefetchScalarGridSpec(
                num_scalar_prefetch=0,
                grid=grid,
                in_specs=[
                    pl.BlockSpec((1, TM, TK), lambda b, m, n, k: (b, m, k)),
                    pl.BlockSpec((TK, TN),    lambda b, m, n, k: (k, n)),
                    pl.BlockSpec((1, 2, TN),  lambda b, m, n, k: (b, 0, n)),
                ],
                out_specs=pl.BlockSpec((1, TM, TN), lambda b, m, n, k: (b, m, n)),
                scratch_shapes=[pltpu.VMEM((TM, TN), jnp.float32)],
            ),
            compiler_params=pltpu.CompilerParams(
                dimension_semantics=("parallel", "parallel", "parallel", "arbitrary"),
                vmem_limit_bytes=vmem_limit,
            ),
        )(x, w_t, gb)

    return out_p[:, :S, :num_out]


def _reference(x, t, lin_w, lin_b, embed_w):
    return (x @ lin_w.T + lin_b) * embed_w[t][:, None, :]


if __name__ == "__main__":
    key = jax.random.PRNGKey(0)

    # ---- Test 1: small shapes consistent with the module's forward ---------
    B, S = 2, 8
    num_in, num_out, n_steps = 32, 32, 10

    k_x, k_t, k_w, k_b, k_e, key = jax.random.split(key, 6)
    x = jax.random.normal(k_x, (B, S, num_in), dtype=jnp.float32)
    t = jax.random.randint(k_t, (B,), 0, n_steps, dtype=jnp.int32)

    bound = 1.0 / (num_in ** 0.5)          # nn.Linear default init range
    lin_w = jax.random.uniform(k_w, (num_out, num_in), jnp.float32, -bound, bound)
    lin_b = jax.random.uniform(k_b, (num_out,), jnp.float32, -bound, bound)
    embed_w = jax.random.uniform(k_e, (n_steps, num_out), jnp.float32, 0.0, 1.0)

    ref = _reference(x, t, lin_w, lin_b, embed_w)

    # Resident-weight fast path, f32 MXU inputs.
    out_f32 = jax.block_until_ready(
        conditional_linear(x, t, lin_w, lin_b, embed_w, use_bf16=False))
    assert out_f32.shape == (B, S, num_out)
    assert jnp.allclose(out_f32, ref, atol=1e-5, rtol=1e-5)

    # Resident-weight fast path, bf16 MXU inputs (f32 accumulation).
    out_bf16 = jax.block_until_ready(
        conditional_linear(x, t, lin_w, lin_b, embed_w, use_bf16=True))
    assert jnp.allclose(out_bf16, ref, atol=2e-2, rtol=2e-2)

    # ---- Test 2: ragged K / N (padding + slice-back), resident path --------
    B2, S2, num_in2, num_out2 = 2, 24, 96, 160
    k_x, k_t, k_w, k_b, k_e, key = jax.random.split(key, 6)
    x2 = jax.random.normal(k_x, (B2, S2, num_in2), dtype=jnp.float32)
    t2 = jax.random.randint(k_t, (B2,), 0, n_steps, dtype=jnp.int32)
    bound2 = 1.0 / (num_in2 ** 0.5)
    lin_w2 = jax.random.uniform(k_w, (num_out2, num_in2), jnp.float32, -bound2, bound2)
    lin_b2 = jax.random.uniform(k_b, (num_out2,), jnp.float32, -bound2, bound2)
    embed_w2 = jax.random.uniform(k_e, (n_steps, num_out2), jnp.float32, 0.0, 1.0)

    ref2 = _reference(x2, t2, lin_w2, lin_b2, embed_w2)
    out2 = jax.block_until_ready(
        conditional_linear(x2, t2, lin_w2, lin_b2, embed_w2, use_bf16=False))
    assert out2.shape == (B2, S2, num_out2)
    assert jnp.allclose(out2, ref2, atol=1e-4, rtol=1e-4)

    # ---- Test 3: force the general K/N-tiled fallback (multi-tile + acc) ---
    B3, S3, num_in3, num_out3 = 2, 16, 256, 256
    k_x, k_t, k_w, k_b, k_e, key = jax.random.split(key, 6)
    x3 = jax.random.normal(k_x, (B3, S3, num_in3), dtype=jnp.float32)
    t3 = jax.random.randint(k_t, (B3,), 0, n_steps, dtype=jnp.int32)
    bound3 = 1.0 / (num_in3 ** 0.5)
    lin_w3 = jax.random.uniform(k_w, (num_out3, num_in3), jnp.float32, -bound3, bound3)
    lin_b3 = jax.random.uniform(k_b, (num_out3,), jnp.float32, -bound3, bound3)
    embed_w3 = jax.random.uniform(k_e, (n_steps, num_out3), jnp.float32, 0.0, 1.0)

    ref3 = _reference(x3, t3, lin_w3, lin_b3, embed_w3)
    out3 = jax.block_until_ready(
        conditional_linear(x3, t3, lin_w3, lin_b3, embed_w3,
                           use_bf16=False, tm=8, tn=128, tk=128,
                           force_general=True))
    assert out3.shape == (B3, S3, num_out3)
    assert jnp.allclose(out3, ref3, atol=1e-4, rtol=1e-4)

    print("KERNEL_OK")
</pallas_src>

<mosaic_0001>
module attributes {stable_mosaic.version = 11 : i64} {
  func.func @_resident_kernel(%arg0: i32, %arg1: i32, %arg2: memref<1x8x128xf32, #tpu.memory_space<vmem>>, %arg3: memref<128x128xf32, #tpu.memory_space<vmem>>, %arg4: memref<1x2x128xf32, #tpu.memory_space<vmem>>, %arg5: memref<1x8x128xf32, #tpu.memory_space<vmem>>) attributes {dimension_semantics = [#tpu.dimension_semantics<parallel>, #tpu.dimension_semantics<parallel>], iteration_bounds = array<i64: 2, 1>, scalar_prefetch = 0 : i64, scratch_operands = 0 : i64, tpu.core_type = #tpu.core_type<tc>, window_params = [{transform_indices = @transform_0, window_bounds = array<i64: 1, 8, 128>}, {pipeline_mode = #tpu.pipeline_mode<synchronous>, transform_indices = @transform_1, window_bounds = array<i64: 128, 128>}, {transform_indices = @transform_2, window_bounds = array<i64: 1, 2, 128>}, {transform_indices = @transform_3, window_bounds = array<i64: 1, 8, 128>}]} {
    %c0 = arith.constant 0 : index
    %c0_0 = arith.constant 0 : index
    %c0_1 = arith.constant 0 : index
    %0 = vector.load %arg2[%c0, %c0_0, %c0_1] : memref<1x8x128xf32, #tpu.memory_space<vmem>>, vector<1x8x128xf32>
    %1 = vector.shape_cast %0 : vector<1x8x128xf32> to vector<8x128xf32>
    %c0_2 = arith.constant 0 : index
    %c0_3 = arith.constant 0 : index
    %2 = vector.load %arg3[%c0_2, %c0_3] : memref<128x128xf32, #tpu.memory_space<vmem>>, vector<128x128xf32>
    %cst = arith.constant dense<0.000000e+00> : vector<8x128xf32>
    %3 = tpu.matmul %1, %2, %cst {dimension_numbers = #tpu.dot_dimension_numbers<[1], [0], [0], [1], [0, 0, 1, 1], [], []>} : vector<8x128xf32>, vector<128x128xf32>, vector<8x128xf32> -> vector<8x128xf32>
    %c0_4 = arith.constant 0 : index
    %c0_5 = arith.constant 0 : index
    %c0_6 = arith.constant 0 : index
    %4 = vector.load %arg4[%c0_4, %c0_5, %c0_6] : memref<1x2x128xf32, #tpu.memory_space<vmem>>, vector<1x2x128xf32>
    %5 = vector.shape_cast %4 : vector<1x2x128xf32> to vector<2x128xf32>
    %6 = vector.extract_strided_slice %5 {offsets = [0, 0], sizes = [1, 128], strides = [1, 1]} : vector<2x128xf32> to vector<1x128xf32>
    %7 = vector.broadcast %6 : vector<1x128xf32> to vector<8x128xf32>
    %8 = arith.mulf %3, %7 : vector<8x128xf32>
    %9 = vector.extract_strided_slice %5 {offsets = [1, 0], sizes = [1, 128], strides = [1, 1]} : vector<2x128xf32> to vector<1x128xf32>
    %10 = vector.broadcast %9 : vector<1x128xf32> to vector<8x128xf32>
    %11 = arith.addf %8, %10 : vector<8x128xf32>
    %c0_7 = arith.constant 0 : index
    %c0_8 = arith.constant 0 : index
    %c0_9 = arith.constant 0 : index
    %12 = vector.load %arg5[%c0_7, %c0_8, %c0_9] : memref<1x8x128xf32, #tpu.memory_space<vmem>>, vector<1x8x128xf32>
    %13 = vector.shape_cast %12 : vector<1x8x128xf32> to vector<8x128xf32>
    %14 = vector.shape_cast %11 : vector<8x128xf32> to vector<1x8x128xf32>
    tpu.vector_store %arg5[%c0_7, %c0_8, %c0_9], %14 {strides = array<i32>} : memref<1x8x128xf32, #tpu.memory_space<vmem>>, vector<1x8x128xf32>,
    return
  }
  func.func @transform_0(%arg0: i32, %arg1: i32) -> (i32, i32, i32) {
    %c0_i32 = arith.constant 0 : i32
    %c0_i32_0 = arith.constant 0 : i32
    return %arg0, %arg1, %c0_i32 : i32, i32, i32
  }
  func.func @transform_1(%arg0: i32, %arg1: i32) -> (i32, i32) {
    %c0_i32 = arith.constant 0 : i32
    %c0_i32_0 = arith.constant 0 : i32
    %c0_i32_1 = arith.constant 0 : i32
    return %c0_i32, %c0_i32_0 : i32, i32
  }
  func.func @transform_2(%arg0: i32, %arg1: i32) -> (i32, i32, i32) {
    %c0_i32 = arith.constant 0 : i32
    %c0_i32_0 = arith.constant 0 : i32
    %c0_i32_1 = arith.constant 0 : i32
    return %arg0, %c0_i32, %c0_i32_0 : i32, i32, i32
  }
  func.func @transform_3(%arg0: i32, %arg1: i32) -> (i32, i32, i32) {
    %c0_i32 = arith.constant 0 : i32
    %c0_i32_0 = arith.constant 0 : i32
    return %arg0, %arg1, %c0_i32 : i32, i32, i32
  }
}

</mosaic_0001>

<bundles_post_ra>
// kernel: tpu_custom_call.1
= control target key start
LH: loop header
LB: loop body
LE: loop exit
PB: predicated region body
PF: predicated region fallthrough
CT: control target
= control target key end

     0   :  { %8 = vsyncpa [#allocation3], 0  ;;  %s1021_s0 = inlined_call_operand.hbm [shape: f32[2,8,128], index: 0, kind: input, shape index: {}]   ;;  %s1022_s1 = inlined_call_operand.hbm [shape: f32[128,128], index: 1, kind: input, shape index: {}]   ;;  %s1023_s2 = inlined_call_operand.vmem [shape: f32[2,2,128], index: 2, kind: input, shape index: {}]   ;;  %s1024_s3 = inlined_call_operand.hbm [shape: f32[2,8,128], index: 3, kind: output, shape index: {}]  }
   0x1   :  { %10 = vsyncpa [#allocation3 + $0x1], 0 }
   0x2   :  { %11 = vsyncpa [#allocation6], 0 }
   0x3   :  { %12 = vsyncpa [#allocation4], 0 }
   0x4   :  { %14 = vsyncpa [#allocation4 + $0x1], 0  ;;  %s795_s12 = smov 0   ;;  %s797_s13 = smov 0  }
   0x5   :  { %s799_s14 = smov 0   ;;  %s801_s15 = smov 0  }
   0x6   :  { %s803_s16 = smov 0   ;;  %s805_s17 = smov 0  }
   0x7 LB: > { %s451_s18 = sadd.s32 4294967295, %s765_s17   ;;  %s452_s19 = sadd.s32 4294967294, %s765_s17   ;;  %s765_s17 = sphi %s805_s17, %s20_s17   ;;  %s761_s16 = sphi %s803_s16, %s1048_s16   ;;  %s757_s15 = sphi %s801_s15, %s1047_s15   ;;  %s753_s14 = sphi %s799_s14, %s1046_s14   ;;  %s749_s13 = sphi %s797_s13, %s1045_s13   ;;  %s745_s12 = sphi %s795_s12, %s1044_s12  }
   0x8   : > { %p54_p0 = scmp.ne.s32.totalorder %s749_s13, %s745_s12  ;;  %p829_p1 = scmp.eq.s32.totalorder %s451_s18, 0 }
   0x9   : > { %p833_p2 = scmp.eq.s32.totalorder %s451_s18, 1  ;;  %p133_p3 = scmp.eq.s32.totalorder %s452_s19, 1 }
   0xa   : > { %s1029_s20 = scalar_select %p829_p1, 1, 0 }
   0xb   : > { %s1030_s21 = scalar_select %p833_p2, 1, 0 }
   0xc   : > { %p839_p4 = por %p829_p1, %p54_p0  ;;  %p453_p5 = scmp.ge.s32.totalorder %s765_s17, 1 }
   0xd   : > { %p844_p6 = por %p133_p3, %p54_p0  ;;  %p140_p7 = scmp.lt.s32.totalorder %s765_s17, 3 }
   0xe   : > { %s1031_s22 = scalar_select %p839_p4, 1, 0 }
   0xf   : > { %s1032_s23 = scalar_select %p844_p6, 1, 0 }
  0x10   : > { %p849_p8 = pnand %p453_p5, %p140_p7  ;;  %s767_s25 = smov [#allocation5]  }
  0x11   : > { %s152_s26 = sshll.u32 %s767_s25, 4  ;;  %s32_s28 = sadd.s32 1, %s761_s16  ;;  %s153_s26 = int_to_ptr.vmem [resolvable:$true] %s152_s26 }
  0x12   : > { %s1033_s24 = scalar_select %p849_p8, 1, 0 }
  0x13   : > { %p551_p9 = pneg %p849_p8  ;;  %s621_s4 = scalar_lea.hbm %s1022_s1, 2048 }
  0x14   : > { %p622_p12 = scmp.ne.s32.totalorder %s1022_s1, %s621_s4  ;;  %p628_p5 = scmp.lt.u32.totalorder %s621_s4, %s1022_s1 }
  0x15   : > { %p858_p11 = pnand %p551_p9, %p829_p1 }
  0x17   : > { %p623_p13 = pneg %p858_p11 }
  0x19   : > { %p624_p0 = pnand %p623_p13, %p622_p12 }
  0x1b   : > { %p625_p3 = pneg %p624_p0 }
  0x1d   : > { %p630_p7 = pnand %p628_p5, %p625_p3 }
  0x1f   : > { %633 = shalt.err (!%p630_p7)
}
  0x20   : > { %s634_s9 = scalar_lea.vmem %s153_s26, 2048  ;;  %p642_p1 = scmp.lt.s32.totalorder %s153_s26, %s153_s26 }
  0x21   : > { %p635_p9 = scmp.ne.s32.totalorder %s153_s26, %s634_s9  ;;  %p643_p4 = scmp.lt.s32.totalorder %s634_s9, %s634_s9 }
  0x23   : > { %p637_p10 = pnand %p635_p9, %p623_p13  ;;  %p644_p8 = por %p643_p4, %p642_p1 }
  0x25   : > { %p638_p6 = pneg %p637_p10 }
  0x27   : > { %p645_p2 = pnand %p644_p8, %p638_p6 }
  0x29   : > { %648 = shalt.err (!%p645_p2)
}
  0x2a   : > { %s768_s10 = smov 128   ;;  %s769_s11 = smov 8  }
  0x2b   : > { %554 = dma.hbm_to_vmem [thread:$0]  (!%p858_p11), %s1022_s1, 2048, %s153_s26, [#allocation6], %s768_s10, %s768_s10, %s769_s11  }
  0x2c   : > { %p34_p1 = scmp.ge.s32.totalorder %s32_s28, 2  ;;  %s41_s25 = sadd.s32 1, %s753_s14 }
  0x2d   : > { %p48_p2 = scmp.ne.s32.totalorder %s753_s14, %s749_s13  ;;  %p49_p4 = scmp.eq.s32.totalorder %s765_s17, 0 }
  0x2e   : > { %s1050_s28 = smov (%p34_p1, %s32_s28), 0  ;;  %p1036_p8 = scmp.ne.s32.totalorder %s1030_s21, 0 }
  0x2f   : > { %p885_p6 = por %p49_p4, %p48_p2  ;;  %s36_s27 = ssub.s32 %s761_s16, %s1050_s28 }
  0x30   : > { %p891_p10 = por %p1036_p8, %p48_p2  ;;  %p564_p12 = scmp.lt.s32.totalorder %s765_s17, 2 }
  0x31   : > { %p39_p11 = scmp.eq.s32.totalorder %s36_s27, 0  ;;  %s166_s26 = sand.u32 1, %s753_s14  }
  0x32   : > { %s456_s4 = sshll.u32 %s166_s26, 3  ;;  %s457_s6 = sshll.u32 %s761_s16, 7 }
  0x33   : > { %s900_s5 = scalar_select %p39_p11, %s753_s14, %s41_s25  }
  0x34   : > { %s906_s9 = scalar_lea.hbm %s1021_s0, %s457_s6  ;;  %s170_s21 = scalar_lea.vmem [#allocation2], %s456_s4 }
  0x35   : > { %s178_s10 = sshll.u32 %s170_s21, 4  ;;  %p912_p13 = pnand %p564_p12, %p885_p6  ;;  %s908_s10 = int_to_ptr.vmem [resolvable:$true] %s178_s10 }
  0x36   : > { %s167_s18 = scalar_lea.sflag [#allocation3], %s166_s26  ;;  %s649_s19 = scalar_lea.hbm %s906_s9, 128 }
  0x37   : > { %p650_p0 = scmp.ne.s32.totalorder %s906_s9, %s649_s19  ;;  %p651_p3 = pneg %p912_p13 }
  0x38   : > { %s654_s4 = scalar_lea.hbm %s1021_s0, 256  ;;  %p655_p9 = scmp.lt.u32.totalorder %s906_s9, %s1021_s0 }
  0x39   : > { %p652_p5 = pnand %p651_p3, %p650_p0  ;;  %p656_p1 = scmp.lt.u32.totalorder %s654_s4, %s649_s19 }
  0x3a   : > { %p658_p4 = scmp.lt.u32.totalorder %s649_s19, %s906_s9 }
  0x3b   : > { %p653_p7 = pneg %p652_p5  ;;  %p657_p2 = por %p656_p1, %p655_p9 }
  0x3d   : > { %p659_p6 = por %p658_p4, %p657_p2 }
  0x3f   : > { %p660_p8 = pnand %p659_p6, %p653_p7 }
  0x41   : > { %663 = shalt.err (!%p660_p8)
}
  0x42   : > { %s664_s26 = scalar_lea.vmem %s908_s10, 128  ;;  %s770_s7 = smov [#allocation2]  }
  0x43   : > { %p665_p12 = scmp.ne.s32.totalorder %s908_s10, %s664_s26  ;;  %s669_s8 = sshll.u32 %s770_s7, 4  ;;  %s670_s8 = int_to_ptr.vmem [resolvable:$false] %s669_s8 }
  0x44   : > { %s671_s21 = scalar_lea.vmem %s670_s8, 256  ;;  %p672_p5 = scmp.lt.s32.totalorder %s908_s10, %s670_s8 }
  0x45   : > { %p667_p11 = pnand %p665_p12, %p651_p3  ;;  %p673_p9 = scmp.lt.s32.totalorder %s671_s21, %s664_s26 }
  0x47   : > { %p668_p0 = pneg %p667_p11  ;;  %p674_p1 = por %p673_p9, %p672_p5 }
  0x49   : > { %p675_p2 = pnand %p674_p1, %p668_p0 }
  0x4b   : > { %678 = shalt.err (!%p675_p2)
}
  0x4c   : > { %558 = dma.hbm_to_vmem [thread:$0]  (!%p912_p13), %s906_s9, 128, %s908_s10, %s167_s18  }
  0x4d   : > { %p1039_p7 = scmp.ne.s32.totalorder %s1033_s24, 0 }
  0x4e   : > { %s944_s19 = sand.u32 (!%p1039_p7), 1, %s749_s13   ;;  %p1040_p3 = scmp.ne.s32.totalorder (!%p1039_p7), %s1031_s22, 0 }
  0x4f   : > { %194 = sbr.rel (%p1039_p7) target bundleno = 355 (0x163), region = 32  ;;  %s459_s25 = sshll.u32 (!%p1039_p7), %s944_s19, 3 }
  0x50   : > { %s197_s27 = scalar_lea.sflag (!%p1039_p7), [#allocation3], %s944_s19  ;;  %s950_s4 = scalar_lea.vmem (!%p1039_p7), [#allocation2], %s459_s25 }
  0x56   : > { %732 = dma.done.wait (%p1040_p3), %s197_s27, 128  }
  0x57   : > { %734 = vsyncadd (%p1040_p3), %s197_s27, 4294967168  ;;  %p1041_p13 = scmp.ne.s32.totalorder %s1029_s20, 0 }
  0x59   : > { %736 = dma.done.wait (%p1041_p13), [#allocation6], 2048  }
  0x5a   : > { %738 = vsyncadd (%p1041_p13), [#allocation6], 4294965248  ;;  %v771_v0 = vmov 0.0|0.0   ;;  %vm772_vm0 = vmmov 0   ;;  %v773_v1 = vmov 0.0   ;;  %v236_v2 = vld [vmem:[#allocation5] sm:$0xff]  ;;  %v323_v27 = vlaneseq }
  0x5b   : > { %519 = vmatprep.subr.bf16.mxu0 %v771_v0  ;;  %516 = vmatprep.mubr.msk.f32.mxu0 %vm772_vm0, %v773_v1  ;;  %v237_v3 = vld [vmem:[#allocation5 + $0x8] sm:$0xff]  ;;  %v238_v4 = vld [vmem:[#allocation5 + $0x10] sm:$0xff]  ;;  %v239_v6 = vld [vmem:[#allocation5 + $0x18] sm:$0xff]  ;;  %p231_p4 = scmp.lt.s32.totalorder %s757_s15, 1  ;;  %s464_s11 = sshll.u32 %s757_s15, 7 }
  0x5c   : > { %v520_v5 = vpack.c.bf16 %v237_v3, %v236_v2  ;;  %v523_v7 = vpack.c.bf16 %v239_v6, %v238_v4  ;;  %v240_v8 = vld [vmem:[#allocation5 + $0x20] sm:$0xff]  ;;  %v241_v9 = vld [vmem:[#allocation5 + $0x28] sm:$0xff]  ;;  %v242_v11 = vld [vmem:[#allocation5 + $0x30] sm:$0xff]  ;;  %v324_v28 = vshrl.u32 %v323_v27, 7  ;;  %s230_s18 = scalar_lea.vmem [#allocation7], %s459_s25  ;;  %s972_s7 = scalar_lea.hbm %s1024_s3, %s464_s11 }
  0x5d   : > { %v526_v10 = vpack.c.bf16 %v241_v9, %v240_v8  ;;  %v243_v12 = vld [vmem:[#allocation5 + $0x38] sm:$0xff]  ;;  %v244_v14 = vld [vmem:[#allocation5 + $0x40] sm:$0xff]  ;;  %v245_v15 = vld [vmem:[#allocation5 + $0x48] sm:$0xff]  ;;  %s232_s20 = scalar_select %p231_p4, %s757_s15, 1 }
  0x5e   : > { %521 = vmatpush3.bf16.msra.mxu0 %v520_v5  ;;  %v529_v13 = vpack.c.bf16 %v243_v12, %v242_v11  ;;  %v532_v16 = vpack.c.bf16 %v245_v15, %v244_v14  ;;  %v246_v17 = vld [vmem:[#allocation5 + $0x50] sm:$0xff]  ;;  %v247_v18 = vld [vmem:[#allocation5 + $0x58] sm:$0xff]  ;;  %v248_v20 = vld [vmem:[#allocation5 + $0x60] sm:$0xff]  ;;  %v325_v29 = vsub.s32 0, %v324_v28  ;;  %v330_v31 = vsub.s32 1, %v324_v28  ;;  %s349_s29 = sshll.u32 %s230_s18, 4  ;;  %s974_s29 = int_to_ptr.vmem [resolvable:$true] %s349_s29 }
  0x5f   : > { %522 = vmatprep.subr.bf16.mxu0 %v771_v0  ;;  %v535_v19 = vpack.c.bf16 %v247_v18, %v246_v17  ;;  %v249_v21 = vld [vmem:[#allocation5 + $0x68] sm:$0xff]  ;;  %v250_v23 = vld [vmem:[#allocation5 + $0x70] sm:$0xff]  ;;  %v251_v24 = vld [vmem:[#allocation5 + $0x78] sm:$0xff]  ;;  %s462_s22 = sshll.u32 %s232_s20, 1  ;;  %s335_s8 = scalar_lea.sflag [#allocation4], %s944_s19 }
  0x60   : > { %v538_v22 = vpack.c.bf16 %v249_v21, %v248_v20  ;;  %v541_v25 = vpack.c.bf16 %v251_v24, %v250_v23  ;;  %v235_v26 = vld [vmem:[%s950_s4] sm:$0xff]  ;;  %s234_s10 = scalar_lea.vmem %s1023_s2, %s462_s22  ;;  %s679_s21 = scalar_lea.vmem %s974_s29, 128 }
  0x61   : > { %v322_v30 = vld [vmem:[%s234_s10] sm:$0x3]  ;;  %p680_p6 = scmp.ne.s32.totalorder %s974_s29, %s679_s21  ;;  %s774_s15 = smov [#allocation7]  }
  0x62   : > { %524 = vmatpush3.bf16.msra.mxu0 %v523_v7  ;;  %v326_v32 = vrot.slane %v322_v30, %v325_v29  ;;  %v331_v33 = vrot.slane %v322_v30, %v330_v31  ;;  %s683_s25 = sshll.u32 %s774_s15, 4  ;;  %s684_s25 = int_to_ptr.vmem [resolvable:$false] %s683_s25 }
  0x63   : > { %525 = vmatprep.subr.bf16.mxu0 %v771_v0  ;;  %p681_p8 = pnand %p680_p6, %p891_p10  ;;  %s685_s27 = scalar_lea.vmem %s684_s25, 256 }
  0x64   : > { %p686_p11 = scmp.lt.s32.totalorder %s974_s29, %s684_s25  ;;  %p687_p0 = scmp.lt.s32.totalorder %s685_s27, %s679_s21 }
  0x65   : > { %p682_p12 = pneg %p681_p8 }
  0x66   : > { %527 = vmatpush3.bf16.msra.mxu0 %v526_v10  ;;  %p688_p5 = por %p687_p0, %p686_p11 }
  0x67   : > { %528 = vmatprep.subr.bf16.mxu0 %v771_v0 }
  0x68   : > { %p689_p9 = pnand %p688_p5, %p682_p12 }
  0x6a   : > { %530 = vmatpush3.bf16.msra.mxu0 %v529_v13 }
  0x6b   : > { %531 = vmatprep.subr.bf16.mxu0 %v771_v0 }
  0x6e   : > { %533 = vmatpush3.bf16.msra.mxu0 %v532_v16 }
  0x6f   : > { %534 = vmatprep.subr.bf16.mxu0 %v771_v0 }
  0x72   : > { %536 = vmatpush3.bf16.msra.mxu0 %v535_v19 }
  0x73   : > { %537 = vmatprep.subr.bf16.mxu0 %v771_v0 }
  0x76   : > { %539 = vmatpush3.bf16.msra.mxu0 %v538_v22 }
  0x77   : > { %540 = vmatprep.subr.bf16.mxu0 %v771_v0 }
  0x7a   : > { %542 = vmatpush3.bf16.msra.mxu0 %v541_v25 }
  0x7d   : > { %517 = vmatmul.mubr.f32.vlgmr.msra.gmra.mrb[0].mxu0 %v235_v26 }
 0x150   : > { %v318_v34 = vpop.f32.mrb[0].mxu0 }
 0x151   : > { %v327_v35 = vmul.f32 %v326_v32, %v318_v34  ;;  %v518_v36 = vpop.f32.mrb[1].mxu0 }
 0x153   : > { %v332_v37 = vadd.f32 %v331_v33, %v327_v35 }
 0x155   : > { %333 = vst [vmem:[%s230_s18] sm:$0xff] %v332_v37 }
 0x156   : > { %692 = shalt.err (!%p689_p9)
}
 0x157   : > { %s693_s19 = scalar_lea.hbm %s972_s7, 128  ;;  %s697_s22 = scalar_lea.hbm %s1024_s3, 256 }
 0x158   : > { %p694_p1 = scmp.ne.s32.totalorder %s972_s7, %s693_s19  ;;  %p698_p3 = scmp.lt.u32.totalorder %s972_s7, %s1024_s3 }
 0x159   : > { %p699_p13 = scmp.lt.u32.totalorder %s697_s22, %s693_s19  ;;  %p701_p6 = scmp.lt.u32.totalorder %s693_s19, %s972_s7 }
 0x15a   : > { %p695_p2 = pnand %p694_p1, %p891_p10 }
 0x15b   : > { %p700_p4 = por %p699_p13, %p698_p3 }
 0x15c   : > { %p696_p7 = pneg %p695_p2 }
 0x15d   : > { %p702_p8 = por %p701_p6, %p700_p4 }
 0x15f   : > { %p703_p12 = pnand %p702_p8, %p696_p7 }
 0x161   : > { %706 = shalt.err (!%p703_p12)
}
 0x162   : > { %549 = dma.vmem_to_hbm [thread:$0]  (%p891_p10), %s974_s29, 128, %s972_s7, %s335_s8  }
 0x163 PF: > { %s361_s10 = sand.u32 1, %s745_s12   ;;  %p1042_p11 = scmp.ne.s32.totalorder %s1032_s23, 0 }
 0x164   : > { %p1043_p0 = scmp.ge.s32.totalorder %s765_s17, 2  ;;  %s362_s11 = scalar_lea.sflag [#allocation4], %s361_s10 }
 0x166   : > { %p560_p5 = pnand %p1043_p0, %p1042_p11 }
 0x168   : > { %740 = dma.done.wait (!%p560_p5), %s362_s11, 128  }
 0x169   : > { %742 = vsyncadd (!%p560_p5), %s362_s11, 4294967168  ;;  %s20_s17 = sadd.s32 1, %s765_s17   ;;  %s1044_s12 = smov %s749_s13 }
 0x16a   : > { %p17_p9 = scmp.ge.s32.totalorder %s20_s17, 4   ;;  %s1045_s13 = smov %s753_s14 }
 0x16b   : > { %s1046_s14 = smov %s900_s5  ;;  %s1047_s15 = smov %s761_s16 }
 0x16c   : > { %s1048_s16 = smov %s1050_s28  ;;  %19 = sbr.rel (!%p17_p9) target bundleno = 7 (0x7), region = 84 }
 0x173   :  { %367 = vsyncpa [#allocation3], 1 }
 0x174   :  { %369 = vsyncpa [#allocation3 + $0x1], 1 }
 0x175   :  { %370 = vsyncpa [#allocation6], 1 }
 0x176   :  { %371 = vsyncpa [#allocation4], 1 }
 0x177   :  { %373 = vsyncpa [#allocation4 + $0x1], 1 }

</bundles_post_ra>
